<compile_context>
chip_gen: v6e
topology: v6e:2x2x1
jax: 0.10.0
libtpu: 0.0.40
codegen_flags: <defaults>
</compile_context>

<pallas_src>
import jax
import jax.numpy as jnp
from jax.experimental import pallas as pl
from jax.experimental.pallas import tpu as pltpu

_LANE = 128
_SUBLANE = 8


def _round_up(n, m):
    return ((n + m - 1) // m) * m


def mlp_kernel(x_ref, w1_ref, b1_ref, w2_ref, b2_ref, o_ref):
    # Fused: out = relu(x @ W1 + b1) @ W2 + b2
    # Matmul inputs may be bf16 (cast here on the VPU); accumulation is f32.
    x = x_ref[...].astype(w1_ref.dtype)            # no-op on the f32 path
    h = jnp.dot(x, w1_ref[...], preferred_element_type=jnp.float32)
    h = jnp.maximum(h + b1_ref[...], 0.0)          # bias + ReLU in f32 (VPU)
    out = jnp.dot(h.astype(w2_ref.dtype), w2_ref[...],
                  preferred_element_type=jnp.float32)
    o_ref[...] = (out + b2_ref[...]).astype(o_ref.dtype)


def _vmem_limit_bytes(tb, in_feat, hidden, out_size, x_itemsize, w_itemsize):
    # VMEM layout lane-pads the minor dim to 128; size with that padding.
    in_v = _round_up(in_feat, _LANE)
    hid_v = _round_up(hidden, _LANE)
    out_v = _round_up(out_size, _LANE)
    need = (2 * tb * in_v * x_itemsize          # double-buffered x tiles
            + 2 * tb * out_v * 4                # double-buffered out tiles
            + (in_v * hid_v + hid_v * out_v) * w_itemsize   # resident weights
            + (hid_v + out_v) * 4               # resident biases
            + 2 * tb * hid_v * 4)               # h / cast intermediates
    need = int(need * 2)                        # headroom for compiler temps
    try:
        physical = pltpu.get_tpu_info().vmem_capacity_bytes
    except Exception:
        physical = 64 * 1024 * 1024             # conservative (v7x per-TC)
    return max(16 * 1024 * 1024, min(need, int(physical * 0.75)))


def mlp_forward(x, w1, b1, w2, b2, *, block_batch=2048, use_bf16=True):
    """x: (batch, time_step, input_size) -> (batch, out_size), float32."""
    batch = x.shape[0]
    in_feat, hidden = w1.shape
    out_size = w2.shape[1]

    x2d = x.reshape(batch, in_feat)  # same flatten order as torch .view

    # Balanced batch tiling: >= 2 tiles whenever batch > 8 (feeds both TCs on
    # v7x), tiles rounded up to 8 sublanes, remainder rows minimal (< 8).
    if batch > _SUBLANE:
        n_tiles = max(pl.cdiv(batch, block_batch), 2)
    else:
        n_tiles = 1
    tb = _round_up(pl.cdiv(batch, n_tiles), _SUBLANE)
    batch_p = _round_up(batch, tb)

    mxu_dtype = jnp.bfloat16 if use_bf16 else jnp.float32
    w_itemsize = jnp.dtype(mxu_dtype).itemsize
    x_itemsize = jnp.dtype(x2d.dtype).itemsize

    # Weights are tiny and resident across all grid steps: one-off host cast.
    w1_m = w1.astype(mxu_dtype)
    w2_m = w2.astype(mxu_dtype)
    b1_m = b1.reshape(1, hidden).astype(jnp.float32)
    b2_m = b2.reshape(1, out_size).astype(jnp.float32)

    # Only the batch axis is padded (to a multiple of tb); feature dims stay
    # at their true widths (full-last-dim BlockSpecs). x keeps its own dtype;
    # the bf16 cast (if any) happens inside the kernel.
    if batch_p != batch:
        x_in = jnp.zeros((batch_p, in_feat), x2d.dtype).at[:batch].set(x2d)
    else:
        x_in = x2d

    grid = (batch_p // tb,)

    flops = 2 * batch_p * (in_feat * hidden + hidden * out_size)
    bytes_accessed = (batch_p * in_feat * x_itemsize
                      + (in_feat * hidden + hidden * out_size) * w_itemsize
                      + (hidden + out_size) * 4
                      + batch_p * out_size * 4)

    out = pl.pallas_call(
        mlp_kernel,
        out_shape=jax.ShapeDtypeStruct((batch_p, out_size), jnp.float32),
        grid=grid,
        in_specs=[
            pl.BlockSpec((tb, in_feat), lambda i: (i, 0)),     # x tile, pipelined
            pl.BlockSpec((in_feat, hidden), lambda i: (0, 0)),  # resident weights
            pl.BlockSpec((1, hidden), lambda i: (0, 0)),
            pl.BlockSpec((hidden, out_size), lambda i: (0, 0)),
            pl.BlockSpec((1, out_size), lambda i: (0, 0)),
        ],
        out_specs=pl.BlockSpec((tb, out_size), lambda i: (i, 0)),
        compiler_params=pltpu.CompilerParams(
            dimension_semantics=("parallel",),
            vmem_limit_bytes=_vmem_limit_bytes(tb, in_feat, hidden, out_size,
                                               x_itemsize, w_itemsize),
        ),
        cost_estimate=pl.CostEstimate(flops=flops, transcendentals=0,
                                      bytes_accessed=bytes_accessed),
    )(x_in, w1_m, b1_m, w2_m, b2_m)

    return out if batch_p == batch else out[:batch]


def init_params(key, input_size, time_step, out_size, hidden=64):
    """Deterministic init mirroring nn.Linear's uniform(-1/sqrt(fan_in), ...)."""
    in_feat = input_size * time_step
    k1, k2, k3, k4 = jax.random.split(key, 4)
    bound1 = 1.0 / jnp.sqrt(in_feat)
    bound2 = 1.0 / jnp.sqrt(hidden)
    # stored as (in, out), i.e. transposed relative to torch's (out, in)
    w1 = jax.random.uniform(k1, (in_feat, hidden), jnp.float32, -bound1, bound1)
    b1 = jax.random.uniform(k2, (1, hidden), jnp.float32, -bound1, bound1)
    w2 = jax.random.uniform(k3, (hidden, out_size), jnp.float32, -bound2, bound2)
    b2 = jax.random.uniform(k4, (1, out_size), jnp.float32, -bound2, bound2)
    return w1, b1, w2, b2


if __name__ == "__main__":
    # Shapes consistent with the module: Input_Size=4, Time_Step=8, Out_Size=8
    input_size, time_step, out_size = 4, 8, 8
    key = jax.random.PRNGKey(0)
    kx, kp = jax.random.split(key)
    w1, b1, w2, b2 = init_params(kp, input_size, time_step, out_size)

    def ref_fn(xx):
        x2d = xx.reshape(xx.shape[0], input_size * time_step)
        return jnp.maximum(x2d @ w1 + b1, 0.0) @ w2 + b2

    # 1) tiny batch (the module's toy shape), exact f32 path
    x_small = jax.random.normal(kx, (2, time_step, input_size), jnp.float32)
    out = jax.block_until_ready(
        mlp_forward(x_small, w1, b1, w2, b2, use_bf16=False))
    assert out.shape == (2, out_size)
    assert jnp.allclose(out, ref_fn(x_small), atol=1e-5, rtol=1e-5)

    # 2) batch large enough to exercise the grid (2 balanced tiles of 320),
    #    default bf16 MXU path (f32 accumulation) -> looser tolerance
    x_big = jax.random.normal(kx, (640, time_step, input_size), jnp.float32)
    out_big = jax.block_until_ready(mlp_forward(x_big, w1, b1, w2, b2))
    assert out_big.shape == (640, out_size)
    assert jnp.allclose(out_big, ref_fn(x_big), atol=5e-2, rtol=5e-2)

    # 3) same batch, exact f32 path, tight tolerance
    out_f32 = jax.block_until_ready(
        mlp_forward(x_big, w1, b1, w2, b2, use_bf16=False))
    assert jnp.allclose(out_f32, ref_fn(x_big), atol=1e-4, rtol=1e-4)

    print("KERNEL_OK")
</pallas_src>

<mosaic_0001>
module attributes {stable_mosaic.version = 11 : i64} {
  func.func @mlp_kernel(%arg0: i32, %arg1: memref<8x32xf32, #tpu.memory_space<vmem>>, %arg2: memref<32x64xf32, #tpu.memory_space<vmem>>, %arg3: memref<1x64xf32, #tpu.memory_space<vmem>>, %arg4: memref<64x8xf32, #tpu.memory_space<vmem>>, %arg5: memref<1x8xf32, #tpu.memory_space<vmem>>, %arg6: memref<8x8xf32, #tpu.memory_space<vmem>>) attributes {dimension_semantics = [#tpu.dimension_semantics<parallel>], iteration_bounds = array<i64: 1>, scalar_prefetch = 0 : i64, scratch_operands = 0 : i64, tpu.core_type = #tpu.core_type<tc>, window_params = [{transform_indices = @transform_0, window_bounds = array<i64: 8, 32>}, {pipeline_mode = #tpu.pipeline_mode<synchronous>, transform_indices = @transform_1, window_bounds = array<i64: 32, 64>}, {pipeline_mode = #tpu.pipeline_mode<synchronous>, transform_indices = @transform_2, window_bounds = array<i64: 1, 64>}, {pipeline_mode = #tpu.pipeline_mode<synchronous>, transform_indices = @transform_3, window_bounds = array<i64: 64, 8>}, {pipeline_mode = #tpu.pipeline_mode<synchronous>, transform_indices = @transform_4, window_bounds = array<i64: 1, 8>}, {transform_indices = @transform_5, window_bounds = array<i64: 8, 8>}]} {
    %c0 = arith.constant 0 : index
    %c0_0 = arith.constant 0 : index
    %0 = vector.load %arg1[%c0, %c0_0] : memref<8x32xf32, #tpu.memory_space<vmem>>, vector<8x32xf32>
    %c0_1 = arith.constant 0 : index
    %c0_2 = arith.constant 0 : index
    %1 = vector.load %arg2[%c0_1, %c0_2] : memref<32x64xf32, #tpu.memory_space<vmem>>, vector<32x64xf32>
    %cst = arith.constant dense<0.000000e+00> : vector<8x64xf32>
    %2 = tpu.matmul %0, %1, %cst {dimension_numbers = #tpu.dot_dimension_numbers<[1], [0], [0], [1], [0, 0, 1, 1], [], []>} : vector<8x32xf32>, vector<32x64xf32>, vector<8x64xf32> -> vector<8x64xf32>
    %c0_3 = arith.constant 0 : index
    %c0_4 = arith.constant 0 : index
    %3 = vector.load %arg3[%c0_3, %c0_4] : memref<1x64xf32, #tpu.memory_space<vmem>>, vector<1x64xf32>
    %4 = vector.broadcast %3 : vector<1x64xf32> to vector<8x64xf32>
    %5 = arith.addf %2, %4 : vector<8x64xf32>
    %cst_5 = arith.constant 0.000000e+00 : f32
    %6 = vector.broadcast %cst_5 : f32 to vector<8x64xf32>
    %7 = arith.maximumf %5, %6 : vector<8x64xf32>
    %c0_6 = arith.constant 0 : index
    %c0_7 = arith.constant 0 : index
    %8 = vector.load %arg4[%c0_6, %c0_7] : memref<64x8xf32, #tpu.memory_space<vmem>>, vector<64x8xf32>
    %cst_8 = arith.constant dense<0.000000e+00> : vector<8x8xf32>
    %9 = tpu.matmul %7, %8, %cst_8 {dimension_numbers = #tpu.dot_dimension_numbers<[1], [0], [0], [1], [0, 0, 1, 1], [], []>} : vector<8x64xf32>, vector<64x8xf32>, vector<8x8xf32> -> vector<8x8xf32>
    %c0_9 = arith.constant 0 : index
    %c0_10 = arith.constant 0 : index
    %10 = vector.load %arg5[%c0_9, %c0_10] : memref<1x8xf32, #tpu.memory_space<vmem>>, vector<1x8xf32>
    %11 = vector.broadcast %10 : vector<1x8xf32> to vector<8x8xf32>
    %12 = arith.addf %9, %11 : vector<8x8xf32>
    %c0_11 = arith.constant 0 : index
    %c0_12 = arith.constant 0 : index
    %13 = vector.load %arg6[%c0_11, %c0_12] : memref<8x8xf32, #tpu.memory_space<vmem>>, vector<8x8xf32>
    tpu.vector_store %arg6[%c0_11, %c0_12], %12 {strides = array<i32>} : memref<8x8xf32, #tpu.memory_space<vmem>>, vector<8x8xf32>,
    return
  }
  func.func @transform_0(%arg0: i32) -> (i32, i32) {
    %c0_i32 = arith.constant 0 : i32
    %c0_i32_0 = arith.constant 0 : i32
    return %arg0, %c0_i32 : i32, i32
  }
  func.func @transform_1(%arg0: i32) -> (i32, i32) {
    %c0_i32 = arith.constant 0 : i32
    %c0_i32_0 = arith.constant 0 : i32
    %c0_i32_1 = arith.constant 0 : i32
    return %c0_i32, %c0_i32_0 : i32, i32
  }
  func.func @transform_2(%arg0: i32) -> (i32, i32) {
    %c0_i32 = arith.constant 0 : i32
    %c0_i32_0 = arith.constant 0 : i32
    %c0_i32_1 = arith.constant 0 : i32
    return %c0_i32, %c0_i32_0 : i32, i32
  }
  func.func @transform_3(%arg0: i32) -> (i32, i32) {
    %c0_i32 = arith.constant 0 : i32
    %c0_i32_0 = arith.constant 0 : i32
    %c0_i32_1 = arith.constant 0 : i32
    return %c0_i32, %c0_i32_0 : i32, i32
  }
  func.func @transform_4(%arg0: i32) -> (i32, i32) {
    %c0_i32 = arith.constant 0 : i32
    %c0_i32_0 = arith.constant 0 : i32
    %c0_i32_1 = arith.constant 0 : i32
    return %c0_i32, %c0_i32_0 : i32, i32
  }
  func.func @transform_5(%arg0: i32) -> (i32, i32) {
    %c0_i32 = arith.constant 0 : i32
    %c0_i32_0 = arith.constant 0 : i32
    return %arg0, %c0_i32 : i32, i32
  }
}

</mosaic_0001>

<bundles_post_ra>
// kernel: tpu_custom_call.1
= control target key start
LH: loop header
LB: loop body
LE: loop exit
PB: predicated region body
PF: predicated region fallthrough
CT: control target
= control target key end

     0   :  { %v286_v1 = vmov 0.0   ;;  %vm287_vm0 = vmmov 0   ;;  %s369_s0 = inlined_call_operand.vmem [shape: f32[8,32], index: 0, kind: input, shape index: {}]   ;;  %s370_s1 = inlined_call_operand.vmem [shape: f32[32,64], index: 1, kind: input, shape index: {}]   ;;  %s371_s2 = inlined_call_operand.vmem [shape: f32[1,64], index: 2, kind: input, shape index: {}]   ;;  %s372_s3 = inlined_call_operand.vmem [shape: f32[64,8], index: 3, kind: input, shape index: {}]   ;;  %s373_s4 = inlined_call_operand.vmem [shape: f32[1,8], index: 4, kind: input, shape index: {}]   ;;  %s374_s5 = inlined_call_operand.hbm [shape: f32[8,8], index: 5, kind: output, shape index: {}]  }
   0x1   :  { %v25_v0 = vld [vmem:[%s370_s1 + $0x18] sm:$0xff]  ;;  %231 = vmatprep.subr.mxu0 %v286_v1  ;;  %v24_v2 = vld [vmem:[%s370_s1 + $0x10] sm:$0xff]  ;;  %239 = vmatprep.mubr.msk.f32.mxu0 %vm287_vm0, %v286_v1  ;;  %v23_v5 = vld [vmem:[%s370_s1 + $0x8] sm:$0xff] }
   0x2   :  { %v115_v3 = vld [vmem:[%s372_s3 + $0x38] sm:$0xff]  ;;  %232 = vmatpush3.msra.mxu0 %v25_v0  ;;  %242 = vmatprep.subr.mxu1 %v286_v1  ;;  %v114_v4 = vld [vmem:[%s372_s3 + $0x30] sm:$0xff] }
   0x3   :  { %233 = vmatprep.subr.mxu0 %v286_v1  ;;  %243 = vmatpush3.msra.mxu1 %v115_v3 }
   0x4   :  { %10 = vsyncpa [#allocation3], 0  ;;  %234 = vmatpush3.msra.mxu0 %v24_v2  ;;  %244 = vmatprep.subr.mxu1 %v286_v1  ;;  %v113_v6 = vld [vmem:[%s372_s3 + $0x28] sm:$0xff]  ;;  %v22_v7 = vld [vmem:[%s370_s1] sm:$0xff]  ;;  %vm33_vm1 = vcmask 261120   ;;  %vm123_vm2 = vcmask 523264  }
   0x5   :  { %235 = vmatprep.subr.mxu0 %v286_v1  ;;  %245 = vmatpush3.msra.mxu1 %v114_v4  ;;  %v21_v8 = vld [vmem:[%s369_s0] sm:$0xff]  ;;  %v111_v10 = vld [vmem:[%s372_s3 + $0x18] sm:$0xff]  ;;  %v110_v11 = vld [vmem:[%s372_s3 + $0x10] sm:$0xff]  ;;  %s288_s21 = smov [#allocation2]   ;;  %vm197_vm3 = vcmask 64512  }
   0x6   :  { %236 = vmatpush3.msra.mxu0 %v23_v5  ;;  %246 = vmatprep.subr.mxu1 %v286_v1  ;;  %v112_v9 = vld [vmem:[%s372_s3 + $0x20] sm:$0xff]  ;;  %v109_v12 = vld [vmem:[%s372_s3 + $0x8] sm:$0xff]  ;;  %s205_s22 = sshll.u32 %s288_s21, 4  ;;  %s206_s22 = int_to_ptr.vmem [resolvable:$true] %s205_s22 }
   0x7   :  { %237 = vmatprep.subr.mxu0 %v286_v1  ;;  %247 = vmatpush3.msra.mxu1 %v113_v6  ;;  %v108_v13 = vld [vmem:[%s372_s3] sm:$0xff]  ;;  %s264_s3 = scalar_lea.vmem %s206_s22, 128  ;;  %p269_p1 = scmp.lt.s32.totalorder %s206_s22, %s206_s22 }
   0x8   :  { %238 = vmatpush3.msra.mxu0 %v22_v7  ;;  %248 = vmatprep.subr.mxu1 %v286_v1  ;;  %v213_v14 = vld [vmem:[%s371_s2] ss:$0 sm:$0xff]  ;;  %p265_p0 = scmp.ne.s32.totalorder %s206_s22, %s264_s3  ;;  %p270_p2 = scmp.lt.s32.totalorder %s264_s3, %s264_s3 }
   0x9   :  { %240 = vmatmul.mubr.msk.f32.vlgmr.msra.gmra.mxu0 %vm33_vm1, %v21_v8  ;;  %249 = vmatpush3.msra.mxu1 %v112_v9  ;;  %v215_v19 = vld [vmem:[%s373_s4] ss:$0 sm:$0xff] }
   0xa   :  { %250 = vmatprep.subr.mxu1 %v286_v1  ;;  %258 = vmatprep.mubr.msk.f32.mxu1 %vm287_vm0, %v286_v1  ;;  %p271_p3 = por %p270_p2, %p269_p1 }
   0xb   :  { %251 = vmatpush3.msra.mxu1 %v111_v10 }
   0xc   :  { %252 = vmatprep.subr.mxu1 %v286_v1  ;;  %p272_p4 = pnand %p271_p3, %p265_p0 }
   0xd   :  { %253 = vmatpush3.msra.mxu1 %v110_v11 }
   0xe   :  { %254 = vmatprep.subr.mxu1 %v286_v1 }
   0xf   :  { %255 = vmatpush3.msra.mxu1 %v109_v12 }
  0x10   :  { %256 = vmatprep.subr.mxu1 %v286_v1 }
  0x11   :  { %257 = vmatpush3.msra.mxu1 %v108_v13 }
  0xc9   :  { %v103_v15 = vpop.f32.mrf.mxu0 }
  0xca   :  { %v104_v16 = vadd.f32 %v213_v14, %v103_v15 }
  0xcb   :  { %v241_v17 = vpop.f32.mrf.mxu0 }
  0xcc   :  { %v107_v18 = vmax.f32 %v104_v16, 0.0 }
  0xce   :  { %259 = vmatmul.mubr.msk.f32.vlgmr.msra.gmra.mxu1 %vm123_vm2, %v107_v18 }
 0x18e   :  { %v193_v20 = vpop.f32.mrf.mxu1 }
 0x18f   :  { %v194_v21 = vadd.f32 %v215_v19, %v193_v20 }
 0x190   :  { %v260_v22 = vpop.f32.mrf.mxu1 }
 0x191   :  { %198 = vst.msk [vmem:[#allocation2] sm:$0xff] %vm197_vm3, %v194_v21 }
 0x192   :  { %275 = shalt.err (!%p272_p4)
}
 0x193   :  { %208 = dma.vmem_to_hbm [thread:$0]  %s206_s22, 128, %s374_s5, [#allocation3]  }
 0x194   :  { %284 = dma.done.wait [#allocation3], 128  }
 0x195   :  { %285 = vsyncadd [#allocation3], 4294967168 }
 0x196   :  { %212 = vsyncpa [#allocation3], 1 }

</bundles_post_ra>
